<compile_context>
chip_gen: v5e
topology: v5e:2x2
jax: 0.10.0
libtpu: 0.0.40
codegen_flags: <defaults>
</compile_context>

<pallas_src>
import math

import jax
import jax.numpy as jnp
from jax.experimental import pallas as pl
from jax.experimental.pallas import tpu as pltpu

LN_EPS = 1e-5
_INV_SQRT2 = 1.0 / math.sqrt(2.0)
_LANES = 128
_VMEM_BUDGET = 40 * (1 << 20)      # conservative: fits v7x 64 MiB/TC with headroom


def _round_up(x, m):
    return ((x + m - 1) // m) * m


def _cdiv(a, b):
    return -(-a // b)


def router_kernel(x_ref, w1_ref, b1_ref, g_ref, beta_ref, w2_ref, b2_ref, o_ref):
    """Fused Linear -> LayerNorm -> GELU -> Linear for one row tile."""
    # ---- Linear 1: bf16 MXU path, f32 accumulation ----
    x = x_ref[...].astype(w1_ref.dtype)
    h = jnp.dot(x, w1_ref[...], preferred_element_type=jnp.float32) + b1_ref[...]

    # ---- LayerNorm over hidden axis (two-pass variance, f32) ----
    mu = jnp.mean(h, axis=-1, keepdims=True)
    centered = h - mu
    var = jnp.mean(centered * centered, axis=-1, keepdims=True)
    inv = jax.lax.rsqrt(var + LN_EPS)                      # EUP slot
    hn = centered * inv * g_ref[...] + beta_ref[...]

    # ---- Exact (erf) GELU — torch.nn.GELU() default ----
    # (tanh approximation would ride the EUP slot instead of the VPU erf
    #  polynomial, but exact erf is the spec.)
    act = 0.5 * hn * (1.0 + jax.lax.erf(hn * _INV_SQRT2))

    # ---- Linear 2: bf16 MXU path, f32 accumulation; lane-dense store ----
    out = jnp.dot(act.astype(w2_ref.dtype), w2_ref[...],
                  preferred_element_type=jnp.float32) + b2_ref[...]
    o_ref[...] = out.astype(o_ref.dtype)


def prepare_router_params(torch_params, *, compute_dtype=jnp.bfloat16):
    """One-time conversion of PyTorch-layout Router params to kernel layout.

    - fc weights transposed to (in, out) and cast to `compute_dtype` ONCE
      (not per forward call) -> bf16 MXU path, half the weight HBM traffic.
    - fc2 weight / bias columns zero-padded so the output block's last dim is a
      multiple of 128 lanes (unmasked, lane-dense stores).
    - LayerNorm / bias params stay f32 (elementwise math runs in f32).
    """
    hdim, _cin = torch_params["fc1_weight"].shape
    cout = torch_params["fc2_weight"].shape[0]
    cout_pad = _round_up(cout, _LANES)

    w1 = jnp.asarray(torch_params["fc1_weight"], jnp.float32).T.astype(compute_dtype)
    b1 = jnp.asarray(torch_params["fc1_bias"], jnp.float32).reshape(1, hdim)
    gamma = jnp.asarray(torch_params["ln_weight"], jnp.float32).reshape(1, hdim)
    beta = jnp.asarray(torch_params["ln_bias"], jnp.float32).reshape(1, hdim)
    w2 = jnp.asarray(torch_params["fc2_weight"], jnp.float32).T        # (H, Cout)
    b2 = jnp.asarray(torch_params["fc2_bias"], jnp.float32).reshape(1, cout)
    if cout_pad != cout:
        w2 = jnp.pad(w2, ((0, 0), (0, cout_pad - cout)))
        b2 = jnp.pad(b2, ((0, 0), (0, cout_pad - cout)))
    w2 = w2.astype(compute_dtype)
    return {"w1": w1, "b1": b1, "gamma": gamma, "beta": beta,
            "w2": w2, "b2": b2, "out_channels": int(cout)}


def _vmem_bytes(tm, cin, hdim, cout_pad, x_itemsize, out_itemsize, w_itemsize):
    x_buf = 2 * tm * cin * x_itemsize                  # double-buffered row tile
    o_buf = 2 * tm * cout_pad * out_itemsize           # double-buffered out tile
    weights = (cin * hdim + hdim * cout_pad) * w_itemsize \
        + (3 * hdim + cout_pad) * 4                    # single-buffered residents
    temps = 4 * tm * hdim * 4                          # h / hn / act / erf f32 temps
    return x_buf + o_buf + weights + temps


def router_forward(x, prepared, *, block_rows=512):
    """x: (..., in_channels) -> (..., out_channels), same dtype as x."""
    orig_dtype = x.dtype
    *lead, cin = x.shape
    m = 1
    for d in lead:
        m *= d

    w1 = prepared["w1"]
    b1 = prepared["b1"]
    gamma = prepared["gamma"]
    beta = prepared["beta"]
    w2 = prepared["w2"]
    b2 = prepared["b2"]
    cout = prepared["out_channels"]
    hdim = w1.shape[1]
    cout_pad = w2.shape[1]

    x2 = x.reshape(m, cin)

    # Balanced row tiles: pad at most 8 rows per tile, and force >= 2 grid steps
    # when possible so megacore sharding (v7x) uses both TensorCores.
    nt = max(1, _cdiv(m, block_rows))
    if nt < 2 and m >= 16:
        nt = 2
    tm = _round_up(_cdiv(m, nt), 8)
    # Shrink the row tile if the per-step VMEM footprint would not fit the budget.
    while tm > 8 and _vmem_bytes(tm, cin, hdim, cout_pad,
                                 x2.dtype.itemsize, orig_dtype.itemsize,
                                 w1.dtype.itemsize) > _VMEM_BUDGET:
        nt *= 2
        tm = _round_up(_cdiv(m, nt), 8)
    m_pad = _round_up(m, tm)
    if m_pad != m:
        # Small pad (<= 8*nt rows). Padded rows produce finite garbage (LN with
        # ~zero variance) and are sliced off below.
        x2 = jnp.pad(x2, ((0, m_pad - m), (0, 0)))

    est = _vmem_bytes(tm, cin, hdim, cout_pad, x2.dtype.itemsize,
                      orig_dtype.itemsize, w1.dtype.itemsize)
    vmem_limit = int(min(max(est * 3 // 2, 32 * (1 << 20)), 56 * (1 << 20)))

    # Resident operands: constant index_map -> fetched once; no double buffer.
    resident = dict(pipeline_mode=pl.Buffered(1))

    out = pl.pallas_call(
        router_kernel,
        out_shape=jax.ShapeDtypeStruct((m_pad, cout_pad), orig_dtype),
        grid_spec=pltpu.PrefetchScalarGridSpec(
            num_scalar_prefetch=0,
            grid=(m_pad // tm,),
            in_specs=[
                # x row tile (streamed; bump to pl.Buffered(3) only if xprof
                # shows exposed DMA under the two thin matmuls).
                pl.BlockSpec((tm, cin), lambda i: (i, 0)),
                pl.BlockSpec((cin, hdim), lambda i: (0, 0), **resident),      # W1
                pl.BlockSpec((1, hdim), lambda i: (0, 0), **resident),        # b1
                pl.BlockSpec((1, hdim), lambda i: (0, 0), **resident),        # gamma
                pl.BlockSpec((1, hdim), lambda i: (0, 0), **resident),        # beta
                pl.BlockSpec((hdim, cout_pad), lambda i: (0, 0), **resident), # W2
                pl.BlockSpec((1, cout_pad), lambda i: (0, 0), **resident),    # b2
            ],
            # Lane-dense output (cout_pad is a multiple of 128 -> unmasked vst).
            out_specs=pl.BlockSpec((tm, cout_pad), lambda i: (i, 0)),
        ),
        compiler_params=pltpu.CompilerParams(
            dimension_semantics=("parallel",),
            vmem_limit_bytes=vmem_limit,
        ),
    )(x2, w1, b1, gamma, beta, w2, b2)

    return out[:m, :cout].reshape(*lead, cout)


def router_reference(x, torch_params):
    """Pure-JAX f32 reference mirroring the PyTorch Router forward."""
    xf = x.astype(jnp.float32)
    h = xf @ jnp.asarray(torch_params["fc1_weight"], jnp.float32).T \
        + jnp.asarray(torch_params["fc1_bias"], jnp.float32)
    mu = jnp.mean(h, axis=-1, keepdims=True)
    var = jnp.var(h, axis=-1, keepdims=True)                     # biased, as torch
    hn = (h - mu) / jnp.sqrt(var + LN_EPS) \
        * jnp.asarray(torch_params["ln_weight"], jnp.float32) \
        + jnp.asarray(torch_params["ln_bias"], jnp.float32)
    act = 0.5 * hn * (1.0 + jax.lax.erf(hn * _INV_SQRT2))
    out = act @ jnp.asarray(torch_params["fc2_weight"], jnp.float32).T \
        + jnp.asarray(torch_params["fc2_bias"], jnp.float32)
    return out.astype(x.dtype)


if __name__ == "__main__":
    in_channels, out_channels = 32, 16
    hidden = out_channels * 4                                    # 64
    batch, seq = 2, 8

    key = jax.random.PRNGKey(0)
    kx, k1, k2, k3, k4, k5, k6 = jax.random.split(key, 7)
    x = jax.random.normal(kx, (batch, seq, in_channels), dtype=jnp.float32)

    # Deterministic synthetic parameters (PyTorch layout: Linear weight is (out, in)).
    s1 = 1.0 / math.sqrt(in_channels)
    s2 = 1.0 / math.sqrt(hidden)
    torch_params = {
        "fc1_weight": s1 * jax.random.normal(k1, (hidden, in_channels), jnp.float32),
        "fc1_bias": s1 * jax.random.normal(k2, (hidden,), jnp.float32),
        "ln_weight": 1.0 + 0.1 * jax.random.normal(k3, (hidden,), jnp.float32),
        "ln_bias": 0.1 * jax.random.normal(k4, (hidden,), jnp.float32),
        "fc2_weight": s2 * jax.random.normal(k5, (out_channels, hidden), jnp.float32),
        "fc2_bias": s2 * jax.random.normal(k6, (out_channels,), jnp.float32),
    }

    # One-time param prep (transpose + bf16 cast + lane padding), hoisted out of
    # the per-call path.
    prepared = prepare_router_params(torch_params)

    out = jax.block_until_ready(router_forward(x, prepared))
    ref = jax.block_until_ready(router_reference(x, torch_params))

    assert out.shape == (batch, seq, out_channels) and out.dtype == x.dtype
    # bf16 MXU path vs. f32 torch-semantics reference -> loosened tolerance.
    max_err = float(jnp.max(jnp.abs(out.astype(jnp.float32) - ref.astype(jnp.float32))))
    assert jnp.allclose(out, ref, atol=5e-2, rtol=5e-2), \
        f"mismatch vs reference (max abs err {max_err})"
    print("KERNEL_OK")
</pallas_src>

<mosaic_0001>
module attributes {stable_mosaic.version = 11 : i64} {
  func.func @router_kernel(%arg0: i32, %arg1: memref<8x32xf32, #tpu.memory_space<vmem>>, %arg2: memref<32x64xbf16, #tpu.memory_space<vmem>>, %arg3: memref<1x64xf32, #tpu.memory_space<vmem>>, %arg4: memref<1x64xf32, #tpu.memory_space<vmem>>, %arg5: memref<1x64xf32, #tpu.memory_space<vmem>>, %arg6: memref<64x128xbf16, #tpu.memory_space<vmem>>, %arg7: memref<1x128xf32, #tpu.memory_space<vmem>>, %arg8: memref<8x128xf32, #tpu.memory_space<vmem>>) attributes {dimension_semantics = [#tpu.dimension_semantics<parallel>], iteration_bounds = array<i64: 2>, scalar_prefetch = 0 : i64, scratch_operands = 0 : i64, tpu.core_type = #tpu.core_type<tc>, window_params = [{transform_indices = @transform_0, window_bounds = array<i64: 8, 32>}, {pipeline_mode = #tpu.pipeline_mode<synchronous>, transform_indices = @transform_1, window_bounds = array<i64: 32, 64>}, {pipeline_mode = #tpu.pipeline_mode<synchronous>, transform_indices = @transform_2, window_bounds = array<i64: 1, 64>}, {pipeline_mode = #tpu.pipeline_mode<synchronous>, transform_indices = @transform_3, window_bounds = array<i64: 1, 64>}, {pipeline_mode = #tpu.pipeline_mode<synchronous>, transform_indices = @transform_4, window_bounds = array<i64: 1, 64>}, {pipeline_mode = #tpu.pipeline_mode<synchronous>, transform_indices = @transform_5, window_bounds = array<i64: 64, 128>}, {pipeline_mode = #tpu.pipeline_mode<synchronous>, transform_indices = @transform_6, window_bounds = array<i64: 1, 128>}, {transform_indices = @transform_7, window_bounds = array<i64: 8, 128>}]} {
    %c0 = arith.constant 0 : index
    %c0_0 = arith.constant 0 : index
    %0 = vector.load %arg1[%c0, %c0_0] : memref<8x32xf32, #tpu.memory_space<vmem>>, vector<8x32xf32>
    %1 = arith.truncf %0 : vector<8x32xf32> to vector<8x32xbf16>
    %c0_1 = arith.constant 0 : index
    %c0_2 = arith.constant 0 : index
    %2 = vector.load %arg2[%c0_1, %c0_2] : memref<32x64xbf16, #tpu.memory_space<vmem>>, vector<32x64xbf16>
    %cst = arith.constant dense<0.000000e+00> : vector<8x64xf32>
    %3 = tpu.matmul %1, %2, %cst {dimension_numbers = #tpu.dot_dimension_numbers<[1], [0], [0], [1], [0, 0, 1, 1], [], []>} : vector<8x32xbf16>, vector<32x64xbf16>, vector<8x64xf32> -> vector<8x64xf32>
    %c0_3 = arith.constant 0 : index
    %c0_4 = arith.constant 0 : index
    %4 = vector.load %arg3[%c0_3, %c0_4] : memref<1x64xf32, #tpu.memory_space<vmem>>, vector<1x64xf32>
    %5 = vector.broadcast %4 : vector<1x64xf32> to vector<8x64xf32>
    %6 = arith.addf %3, %5 : vector<8x64xf32>
    %cst_5 = arith.constant dense<0.000000e+00> : vector<8xf32>
    %7 = vector.multi_reduction <add>, %6, %cst_5 [1] : vector<8x64xf32> to vector<8xf32>
    %8 = vector.shape_cast %7 : vector<8xf32> to vector<8x1xf32>
    %cst_6 = arith.constant 6.400000e+01 : f32
    %9 = vector.broadcast %cst_6 : f32 to vector<8x1xf32>
    %10 = arith.divf %8, %9 : vector<8x1xf32>
    %11 = vector.broadcast %10 : vector<8x1xf32> to vector<8x64xf32>
    %12 = arith.subf %6, %11 : vector<8x64xf32>
    %13 = arith.mulf %12, %12 : vector<8x64xf32>
    %cst_7 = arith.constant dense<0.000000e+00> : vector<8xf32>
    %14 = vector.multi_reduction <add>, %13, %cst_7 [1] : vector<8x64xf32> to vector<8xf32>
    %15 = vector.shape_cast %14 : vector<8xf32> to vector<8x1xf32>
    %cst_8 = arith.constant 6.400000e+01 : f32
    %16 = vector.broadcast %cst_8 : f32 to vector<8x1xf32>
    %17 = arith.divf %15, %16 : vector<8x1xf32>
    %cst_9 = arith.constant 9.99999974E-6 : f32
    %18 = vector.broadcast %cst_9 : f32 to vector<8x1xf32>
    %19 = arith.addf %17, %18 : vector<8x1xf32>
    %20 = math.rsqrt %19 : vector<8x1xf32>
    %21 = vector.broadcast %20 : vector<8x1xf32> to vector<8x64xf32>
    %22 = arith.mulf %12, %21 : vector<8x64xf32>
    %c0_10 = arith.constant 0 : index
    %c0_11 = arith.constant 0 : index
    %23 = vector.load %arg4[%c0_10, %c0_11] : memref<1x64xf32, #tpu.memory_space<vmem>>, vector<1x64xf32>
    %24 = vector.broadcast %23 : vector<1x64xf32> to vector<8x64xf32>
    %25 = arith.mulf %22, %24 : vector<8x64xf32>
    %c0_12 = arith.constant 0 : index
    %c0_13 = arith.constant 0 : index
    %26 = vector.load %arg5[%c0_12, %c0_13] : memref<1x64xf32, #tpu.memory_space<vmem>>, vector<1x64xf32>
    %27 = vector.broadcast %26 : vector<1x64xf32> to vector<8x64xf32>
    %28 = arith.addf %25, %27 : vector<8x64xf32>
    %cst_14 = arith.constant 5.000000e-01 : f32
    %29 = vector.broadcast %cst_14 : f32 to vector<8x64xf32>
    %30 = arith.mulf %29, %28 : vector<8x64xf32>
    %cst_15 = arith.constant 0.707106769 : f32
    %31 = vector.broadcast %cst_15 : f32 to vector<8x64xf32>
    %32 = arith.mulf %28, %31 : vector<8x64xf32>
    %33 = math.erf %32 : vector<8x64xf32>
    %cst_16 = arith.constant 1.000000e+00 : f32
    %34 = vector.broadcast %cst_16 : f32 to vector<8x64xf32>
    %35 = arith.addf %34, %33 : vector<8x64xf32>
    %36 = arith.mulf %30, %35 : vector<8x64xf32>
    %37 = arith.truncf %36 : vector<8x64xf32> to vector<8x64xbf16>
    %c0_17 = arith.constant 0 : index
    %c0_18 = arith.constant 0 : index
    %38 = vector.load %arg6[%c0_17, %c0_18] : memref<64x128xbf16, #tpu.memory_space<vmem>>, vector<64x128xbf16>
    %cst_19 = arith.constant dense<0.000000e+00> : vector<8x128xf32>
    %39 = tpu.matmul %37, %38, %cst_19 {dimension_numbers = #tpu.dot_dimension_numbers<[1], [0], [0], [1], [0, 0, 1, 1], [], []>} : vector<8x64xbf16>, vector<64x128xbf16>, vector<8x128xf32> -> vector<8x128xf32>
    %c0_20 = arith.constant 0 : index
    %c0_21 = arith.constant 0 : index
    %40 = vector.load %arg7[%c0_20, %c0_21] : memref<1x128xf32, #tpu.memory_space<vmem>>, vector<1x128xf32>
    %41 = vector.broadcast %40 : vector<1x128xf32> to vector<8x128xf32>
    %42 = arith.addf %39, %41 : vector<8x128xf32>
    %c0_22 = arith.constant 0 : index
    %c0_23 = arith.constant 0 : index
    %43 = vector.load %arg8[%c0_22, %c0_23] : memref<8x128xf32, #tpu.memory_space<vmem>>, vector<8x128xf32>
    tpu.vector_store %arg8[%c0_22, %c0_23], %42 {strides = array<i32>} : memref<8x128xf32, #tpu.memory_space<vmem>>, vector<8x128xf32>,
    return
  }
  func.func @transform_0(%arg0: i32) -> (i32, i32) {
    %c0_i32 = arith.constant 0 : i32
    %c0_i32_0 = arith.constant 0 : i32
    return %arg0, %c0_i32 : i32, i32
  }
  func.func @transform_1(%arg0: i32) -> (i32, i32) {
    %c0_i32 = arith.constant 0 : i32
    %c0_i32_0 = arith.constant 0 : i32
    %c0_i32_1 = arith.constant 0 : i32
    return %c0_i32, %c0_i32_0 : i32, i32
  }
  func.func @transform_2(%arg0: i32) -> (i32, i32) {
    %c0_i32 = arith.constant 0 : i32
    %c0_i32_0 = arith.constant 0 : i32
    %c0_i32_1 = arith.constant 0 : i32
    return %c0_i32, %c0_i32_0 : i32, i32
  }
  func.func @transform_3(%arg0: i32) -> (i32, i32) {
    %c0_i32 = arith.constant 0 : i32
    %c0_i32_0 = arith.constant 0 : i32
    %c0_i32_1 = arith.constant 0 : i32
    return %c0_i32, %c0_i32_0 : i32, i32
  }
  func.func @transform_4(%arg0: i32) -> (i32, i32) {
    %c0_i32 = arith.constant 0 : i32
    %c0_i32_0 = arith.constant 0 : i32
    %c0_i32_1 = arith.constant 0 : i32
    return %c0_i32, %c0_i32_0 : i32, i32
  }
  func.func @transform_5(%arg0: i32) -> (i32, i32) {
    %c0_i32 = arith.constant 0 : i32
    %c0_i32_0 = arith.constant 0 : i32
    %c0_i32_1 = arith.constant 0 : i32
    return %c0_i32, %c0_i32_0 : i32, i32
  }
  func.func @transform_6(%arg0: i32) -> (i32, i32) {
    %c0_i32 = arith.constant 0 : i32
    %c0_i32_0 = arith.constant 0 : i32
    %c0_i32_1 = arith.constant 0 : i32
    return %c0_i32, %c0_i32_0 : i32, i32
  }
  func.func @transform_7(%arg0: i32) -> (i32, i32) {
    %c0_i32 = arith.constant 0 : i32
    %c0_i32_0 = arith.constant 0 : i32
    return %arg0, %c0_i32 : i32, i32
  }
}

</mosaic_0001>

<bundles_post_ra>
// kernel: tpu_custom_call.1
= control target key start
LH: loop header
LB: loop body
LE: loop exit
PB: predicated region body
PF: predicated region fallthrough
CT: control target
= control target key end

     0   :  { %s1112_s0 = inlined_call_operand.hbm [shape: f32[16,32], index: 0, kind: input, shape index: {}]   ;;  %s1113_s1 = inlined_call_operand.hbm [shape: bf16[32,64], index: 1, kind: input, shape index: {}]   ;;  %s1114_s2 = inlined_call_operand.vmem [shape: f32[1,64], index: 2, kind: input, shape index: {}]   ;;  %s1115_s3 = inlined_call_operand.vmem [shape: f32[1,64], index: 3, kind: input, shape index: {}]   ;;  %s1116_s4 = inlined_call_operand.vmem [shape: f32[1,64], index: 4, kind: input, shape index: {}]   ;;  %s1117_s5 = inlined_call_operand.hbm [shape: bf16[64,128], index: 5, kind: input, shape index: {}]   ;;  %s1118_s6 = inlined_call_operand.vmem [shape: f32[1,128], index: 6, kind: input, shape index: {}]   ;;  %s1119_s7 = inlined_call_operand.hbm [shape: f32[16,128], index: 7, kind: output, shape index: {}]  }
   0x1   :  { %1120 = sst [smem:[#allocation12_spill]] %s1113_s1 }
   0x2   :  { %1121 = sst [smem:[#allocation13_spill]] %s1117_s5 }
   0x3   :  { %12 = vsyncpa [#allocation3], 0 }
   0x4   :  { %14 = vsyncpa [#allocation3 + $0x1], 0 }
   0x5   :  { %15 = vsyncpa [#allocation6], 0 }
   0x6   :  { %16 = vsyncpa [#allocation4], 0 }
   0x7   :  { %18 = vsyncpa [#allocation4 + $0x1], 0  ;;  %s948_s24 = smov 0   ;;  %s950_s25 = smov 0  }
   0x8   :  { %s952_s26 = smov 0   ;;  %s954_s27 = smov 0  }
   0x9 LB: > { %s1122_s1 = sld [smem:[#allocation12_spill]]  ;;  %s972_s8 = sadd.s32 4294967295, %s901_s27   ;;  %s901_s27 = sphi %s954_s27, %s1134_s27   ;;  %s897_s26 = sphi %s952_s26, %s1133_s26   ;;  %s893_s25 = sphi %s950_s25, %s1132_s25   ;;  %s889_s24 = sphi %s948_s24, %s1131_s24  }
   0xa   : > { %p613_p0 = scmp.ge.s32.totalorder %s901_s27, 1  ;;  %p45_p1 = scmp.eq.s32.totalorder %s972_s8, 0 }
   0xb   : > { %p207_p2 = scmp.lt.s32.totalorder %s901_s27, 3  ;;  %s903_s10 = smov [#allocation5]  }
   0xc   : > { %s220_s11 = sshll.u32 %s903_s10, 4  ;;  %s1124_s5 = sld [smem:[#allocation13_spill]]  ;;  %s221_s11 = int_to_ptr.vmem [resolvable:$true] %s220_s11 }
   0xd   : > { %p977_p3 = pnand %p613_p0, %p207_p2  ;;  %s904_s15 = smov [#allocation7]  }
   0xe   : > { %s243_s16 = sshll.u32 %s904_s15, 4  ;;  %s905_s17 = smov 64   ;;  %s244_s16 = int_to_ptr.vmem [resolvable:$true] %s243_s16 }
   0xf   : > { %s218_s30 = sshll.u32 %s1122_s1, 4  ;;  %p673_p4 = pneg %p977_p3  ;;  %s219_s30 = int_to_ptr.hbm [resolvable:$true] %s218_s30 }
  0x10   : > { %s906_s18 = smov 4   ;;  %s612_s19 = sadd.s32 4294967294, %s901_s27  }
  0x11   : > { %p674_p6 = pnand %p673_p4, %p45_p1  ;;  %s991_s20 = sadd.s32 1, %s901_s27  }
  0x12   : > { %s241_s14 = sshll.u32 %s1124_s5, 4  ;;  %s28_s21 = ssub.s32 %s901_s27, %s991_s20  ;;  %s242_s14 = int_to_ptr.hbm [resolvable:$true] %s241_s14 }
  0x13   : > { %676 = dma.hbm_to_vmem [thread:$0]  (!%p674_p6), %s219_s30, 256, %s221_s11, [#allocation6], %s905_s17, %s905_s17, %s906_s18  }
  0x14   : > { %679 = dma.hbm_to_vmem [thread:$0]  (!%p674_p6), %s242_s14, 512, %s244_s16, [#allocation6], %s905_s17, %s905_s17, %s906_s18  }
  0x15   : > { %s31_s22 = sadd.s32 1, %s897_s26  ;;  %p29_p7 = scmp.eq.s32.totalorder %s28_s21, 0 }
  0x16   : > { %p38_p8 = scmp.ne.s32.totalorder %s897_s26, %s893_s25  ;;  %p39_p9 = scmp.eq.s32.totalorder %s901_s27, 0 }
  0x17   : > { %p44_p10 = scmp.ne.s32.totalorder %s893_s25, %s889_s24  ;;  %p194_p13 = scmp.eq.s32.totalorder %s972_s8, 1 }
  0x18   : > { %s1002_s23 = scalar_select %p29_p7, %s897_s26, %s31_s22  }
  0x19   : > { %p1004_p11 = por %p39_p9, %p38_p8  ;;  %p1010_p12 = por %p45_p1, %p44_p10 }
  0x1a   : > { %p200_p0 = scmp.eq.s32.totalorder %s612_s19, 1  ;;  %p690_p2 = scmp.lt.s32.totalorder %s901_s27, 2 }
  0x1b   : > { %s260_s30 = sand.u32 1, %s897_s26   ;;  %p1017_p4 = por %p194_p13, %p38_p8 }
  0x1c   : > { %p1021_p6 = por %p200_p0, %p44_p10  ;;  %s617_s12 = sshll.u32 %s260_s30, 3 }
  0x1d   : > { %s618_s13 = sshll.u32 %s901_s27, 3  ;;  %s264_s17 = scalar_lea.vmem [#allocation2], %s617_s12 }
  0x1e   : > { %s268_s16 = scalar_lea.hbm %s1112_s0, %s618_s13  ;;  %s272_s18 = sshll.u32 %s264_s17, 4  ;;  %s273_s18 = int_to_ptr.vmem [resolvable:$true] %s272_s18 }
  0x1f   : > { %s270_s21 = sshll.u32 %s268_s16, 4  ;;  %p1031_p7 = pnand %p690_p2, %p1004_p11  ;;  %s271_s21 = int_to_ptr.hbm [resolvable:$true] %s270_s21 }
  0x20   : > { %s261_s22 = scalar_lea.sflag [#allocation3], %s260_s30  ;;  %s801_s1 = sshra.s32 %s271_s21, 4  ;;  %s802_s1 = int_to_ptr.hbm [resolvable:$true] %s801_s1 }
  0x21   : > { %s803_s5 = scalar_lea.hbm %s802_s1, 8  ;;  %p805_p9 = pneg %p1031_p7 }
  0x22   : > { %p804_p8 = scmp.ne.s32.totalorder %s802_s1, %s803_s5  ;;  %s808_s14 = scalar_lea.hbm %s1112_s0, 16 }
  0x23   : > { %p809_p11 = scmp.lt.s32.totalorder %s802_s1, %s1112_s0  ;;  %p810_p0 = scmp.lt.s32.totalorder %s808_s14, %s803_s5 }
  0x24   : > { %p806_p10 = pnand %p805_p9, %p804_p8 }
  0x25   : > { %p811_p2 = por %p810_p0, %p809_p11 }
  0x26   : > { %p807_p13 = pneg %p806_p10 }
  0x28   : > { %p812_p5 = pnand %p811_p2, %p807_p13 }
  0x2a   : > { %815 = shalt.err (!%p812_p5)
}
  0x2b   : > { %683 = dma.hbm_to_vmem [thread:$0]  (!%p1031_p7), %s271_s21, 128, %s273_s18, %s261_s22  }
  0x2c   : > { %281 = sbr.rel (%p977_p3) target bundleno = 643 (0x283), region = 48  ;;  %s1048_s30 = sand.u32 (!%p977_p3), 1, %s893_s25  }
  0x2d   : > { %s620_s16 = sshll.u32 (!%p977_p3), %s1048_s30, 3  ;;  %s284_s17 = scalar_lea.sflag (!%p977_p3), [#allocation3], %s1048_s30 }
  0x2e   : > { %s287_s1 = scalar_lea.vmem (!%p977_p3), [#allocation2], %s620_s16 }
  0x31   : > { %876 = dma.done.wait (%p1010_p12), %s284_s17, 128  }
  0x32   : > { %878 = vsyncadd (%p1010_p12), %s284_s17, 4294967168 }
  0x33   : > { %880 = dma.done.wait (%p45_p1), [#allocation6], 768  }
  0x34   : > { %882 = vsyncadd (%p45_p1), [#allocation6], 4294966528  ;;  %v656_v0 = vld [vmem:[#allocation5 + $0x8] sm:$0xff]  ;;  %v655_v1 = vld [vmem:[#allocation5] sm:$0xff]  ;;  %vm352_vm0 = vcmask 261120   ;;  %vm369_vm1 = vcmask 523264  }
  0x35   : > { %362 = vmatpush.bf16.msra.mxu0 %v656_v0  ;;  %v330_v2 = vld [vmem:[%s287_s1] sm:$0xff]  ;;  %v907_v9 = vmov 64.0   ;;  %v660_v21 = vld [vmem:[#allocation7 + $0x18] sm:$0xff]  ;;  %v659_v22 = vld [vmem:[#allocation7 + $0x10] sm:$0xff]  ;;  %s652_s22 = sshll.u32 %s972_s8, 3  ;;  %s328_s17 = scalar_lea.vmem [#allocation8], %s620_s16 }
  0x36   : > { %v331_v3 = vpack.c.bf16 %v330_v2, %v330_v2  ;;  %v731_v4 = vld [vmem:[%s1114_s2] ss:$0 sm:$0xff]  ;;  %735 = vrcp.f32 %v907_v9  ;;  %497 = vmatpush.bf16.msra.mxu1 %v660_v21  ;;  %v658_v23 = vld [vmem:[#allocation7 + $0x8] sm:$0xff]  ;;  %s518_s14 = scalar_lea.hbm %s1119_s7, %s652_s22  ;;  %s520_s1 = sshll.u32 %s328_s17, 4  ;;  %s521_s1 = int_to_ptr.vmem [resolvable:$true] %s520_s1 }
  0x37   : > { %v657_v26 = vld [vmem:[#allocation7] sm:$0xff]  ;;  %s522_s5 = sshll.u32 %s518_s14, 4  ;;  %s508_s9 = scalar_lea.sflag [#allocation4], %s1048_s30  ;;  %s523_s5 = int_to_ptr.hbm [resolvable:$true] %s522_s5 }
  0x38   : > { %v732_v34 = vld [vmem:[%s1115_s3] ss:$0 sm:$0xff]  ;;  %s845_s8 = sshra.s32 %s523_s5, 4  ;;  %s851_s19 = scalar_lea.hbm %s1119_s7, 16  ;;  %s846_s8 = int_to_ptr.hbm [resolvable:$true] %s845_s8 }
  0x39   : > { %363 = vmatpush.bf16.msra.mxu0 %v655_v1  ;;  %v733_v37 = vld [vmem:[%s1116_s4] ss:$0 sm:$0xff]  ;;  %s847_s29 = scalar_lea.hbm %s846_s8, 8  ;;  %p852_p12 = scmp.lt.s32.totalorder %s846_s8, %s1119_s7 }
  0x3a   : > { %498 = vmatpush.bf16.msra.mxu1 %v659_v22  ;;  %p848_p1 = scmp.ne.s32.totalorder %s846_s8, %s847_s29  ;;  %p853_p7 = scmp.lt.s32.totalorder %s851_s19, %s847_s29 }
  0x3c   : > { %632 = vmatmul.msk.bf16.vlgmr.msra.gmra.mxu0 %vm352_vm0, %v331_v3  ;;  %v736_v10 = vpop.eup %735  ;;  %p849_p3 = pnand %p848_p1, %p1017_p4  ;;  %p854_p8 = por %p853_p7, %p852_p12 }
  0x3d   : > { %v374_v11 = vmul.f32 64.0, %v736_v10  ;;  %vm378_vm2 = vweird.f32 %v736_v10 }
  0x3e   : > { %499 = vmatpush.bf16.msra.mxu1 %v658_v23  ;;  %p850_p5 = pneg %p849_p3 }
  0x3f   : > { %v375_v12 = vsub.f32 1.0, %v374_v11 }
  0x40   : > { %p855_p9 = pnand %p854_p8, %p850_p5 }
  0x41   : > { %v376_v13 = vmul.f32 %v736_v10, %v375_v12 }
  0x42   : > { %500 = vmatpush.bf16.msra.mxu1 %v657_v26 }
  0x43   : > { %v377_v14 = vadd.f32 %v736_v10, %v376_v13 }
  0x45   : > { %v379_v15 = vsel %vm378_vm2, %v736_v10, %v377_v14 }
  0xb9   : > { %v365_v5 = vpop.f32.mrf.mxu0 }
  0xba   : > { %v366_v6 = vadd.f32 %v731_v4, %v365_v5 }
  0xbc   : > { %v370_v7 = vsel %vm369_vm1, %v366_v6, 0.0 }
  0xbd   : > { %371 = vadd.xlane.f32.xlu0 %v370_v7 }
  0xc1   : > { %v367_v8 = vpop.f32.mrf.mxu0 }
 0x130   : > { %v372_v16 = vpop.xlane.xlu0 %371 }
 0x131   : > { %v380_v17 = vmul.f32 %v379_v15, %v372_v16  ;;  %v734_v16 = vld [vmem:[%s1118_s6] ss:$0 sm:$0xff] }
 0x133   : > { %v381_v18 = vsub.f32 %v366_v6, %v380_v17 }
 0x135   : > { %v382_v19 = vmul.f32 %v381_v18, %v381_v18 }
 0x137   : > { %v383_v20 = vsel %vm369_vm1, %v382_v19, 0.0 }
 0x138   : > { %384 = vadd.xlane.f32.xlu0 %v383_v20 }
 0x1ab   : > { %v385_v24 = vpop.xlane.xlu0 %384 }
 0x1ac   : > { %v386_v25 = vmul.f32 %v385_v24, %v379_v15 }
 0x1ae   : > { %v387_v27 = vadd.f32 1e-05, %v386_v25 }
 0x1b0   : > { %737 = vrsqrt.f32 %v387_v27  ;;  %vm394_vm4 = vweird.f32 %v387_v27 }
 0x1b6   : > { %v738_v28 = vpop.eup %737 }
 0x1b7   : > { %v389_v29 = vmul.f32 %v738_v28, %v387_v27  ;;  %vm395_vm3 = vweird.f32 %v738_v28 }
 0x1b8   : > { %vm396_vm5 = vmor %vm394_vm4, %vm395_vm3 }
 0x1b9   : > { %v390_v30 = vmul.f32 %v738_v28, %v389_v29 }
 0x1bb   : > { %v391_v31 = vmul.f32 0.5, %v390_v30 }
 0x1bd   : > { %v392_v32 = vsub.f32 1.5, %v391_v31 }
 0x1bf   : > { %v393_v33 = vmul.f32 %v738_v28, %v392_v32 }
 0x1c1   : > { %v397_v35 = vsel %vm396_vm5, %v738_v28, %v393_v33 }
 0x1c2   : > { %v398_v36 = vmul.f32 %v397_v35, %v381_v18 }
 0x1c4   : > { %v403_v38 = vmul.f32 %v732_v34, %v398_v36 }
 0x1c6   : > { %v408_v39 = vadd.f32 %v733_v37, %v403_v38 }
 0x1c8   : > { %v410_v40 = vmul.f32 0.70710677, %v408_v39  ;;  %v409_v12 = vmul.f32 0.5, %v408_v39 }
 0x1ca   : > { %v411_v41 = vmul.f32 %v410_v40, %v410_v40 }
 0x1cc   : > { %v412_v42 = vmin.f32 %v411_v41, 16.0 }
 0x1ce   : > { %v413_v43 = vmul.f32 2.1237322e-06, %v412_v42  ;;  %v424_v44 = vmul.f32 3.8918573e-05, %v412_v42 }
 0x1d0   : > { %v414_v45 = vadd.f32 0.00028619796, %v413_v43  ;;  %v425_v46 = vadd.f32 0.001143296, %v424_v44 }
 0x1d2   : > { %v415_v47 = vmul.f32 %v414_v45, %v412_v42  ;;  %v426_v48 = vmul.f32 %v425_v46, %v412_v42 }
 0x1d4   : > { %v427_v49 = vadd.f32 0.014752088, %v426_v48  ;;  %v416_v50 = vadd.f32 0.0036580483, %v415_v47 }
 0x1d6   : > { %v428_v51 = vmul.f32 %v427_v49, %v412_v42  ;;  %v417_v53 = vmul.f32 %v416_v50, %v412_v42 }
 0x1d8   : > { %v429_v52 = vadd.f32 0.112945676, %v428_v51  ;;  %v418_v56 = vadd.f32 0.05243302, %v417_v53 }
 0x1da   : > { %v430_v54 = vmul.f32 %v429_v52, %v412_v42  ;;  %v419_v59 = vmul.f32 %v418_v56, %v412_v42 }
 0x1dc   : > { %v431_v55 = vadd.f32 0.4994258, %v430_v54  ;;  %v420_v60 = vadd.f32 0.18741608, %v419_v59 }
 0x1de   : > { %v432_v57 = vmul.f32 %v431_v55, %v412_v42  ;;  %v421_v62 = vmul.f32 %v420_v60, %v412_v42 }
 0x1e0   : > { %v433_v58 = vadd.f32 1.0, %v432_v57  ;;  %v422_v2 = vadd.f32 1.1283791, %v421_v62 }
 0x1e2   : > { %739 = vrcp.f32 %v433_v58  ;;  %v445_v1 = vand.u32 2147483648, %v433_v58  ;;  %v443_v4 = vand.u32 2147483647, %v433_v58  ;;  %vm439_vm7 = vweird.f32 %v433_v58 }
 0x1e3   : > { %v423_v7 = vmul.f32 %v422_v2, %v410_v40 }
 0x1e4   : > { %v446_v6 = vor.u32 1.1754944e-38, %v445_v1  ;;  %vm444_vm9 = vcmp.eq.f32.partialorder %v443_v4, 8.507059e+37 }
 0x1e8   : > { %v740_v61 = vpop.eup %739 }
 0x1e9   : > { %v435_v63 = vmul.f32 %v740_v61, %v433_v58  ;;  %vm440_vm6 = vweird.f32 %v740_v61 }
 0x1ea   : > { %vm441_vm8 = vmor %vm439_vm7, %vm440_vm6 }
 0x1eb   : > { %v436_v0 = vsub.f32 1.0, %v435_v63 }
 0x1ed   : > { %v437_v3 = vmul.f32 %v740_v61, %v436_v0 }
 0x1ef   : > { %v438_v5 = vadd.f32 %v740_v61, %v437_v3 }
 0x1f1   : > { %v442_v8 = vsel %vm441_vm8, %v740_v61, %v438_v5 }
 0x1f2   : > { %v447_v9 = vsel %vm444_vm9, %v446_v6, %v442_v8 }
 0x1f3   : > { %v448_v10 = vmul.f32 %v447_v9, %v423_v7 }
 0x1f5   : > { %v633_v11 = vclamps-f32 %v448_v10, 1.0 }
 0x1f7   : > { %v451_v13 = vadd.f32 1.0, %v633_v11 }
 0x1f9   : > { %v452_v14 = vmul.f32 %v451_v13, %v409_v12 }
 0x1fb   : > { %v453_v15 = vpack.c.bf16 %v452_v14, %v452_v14 }
 0x1fd   : > { %650 = vmatmul.msk.bf16.vlgmr.msra.gmra.mxu1 %vm369_vm1, %v453_v15 }
 0x27a   : > { %v502_v17 = vpop.f32.mrf.mxu1 }
 0x27b   : > { %v503_v18 = vadd.f32 %v734_v16, %v502_v17 }
 0x27d   : > { %506 = vst [vmem:[%s328_s17] sm:$0xff] %v503_v18 }
 0x27e   : > { %858 = shalt.err (!%p855_p9)
}
 0x27f   : > { %671 = dma.vmem_to_hbm [thread:$0]  (%p1017_p4), %s521_s1, 128, %s523_s5, %s508_s9  }
 0x282   : > { %v504_v19 = vpop.f32.mrf.mxu1 }
 0x283 PF: > { %s534_s30 = sand.u32 1, %s889_s24   ;;  %p1130_p10 = scmp.ge.s32.totalorder %s901_s27, 2 }
 0x284   : > { %s535_s12 = scalar_lea.sflag [#allocation4], %s534_s30 }
 0x285   : > { %p685_p13 = pnand %p1130_p10, %p1021_p6 }
 0x287   : > { %p686_p11 = pneg %p685_p13 }
 0x289   : > { %884 = dma.done.wait (%p686_p11), %s535_s12, 128  }
 0x28a   : > { %886 = vsyncadd (%p686_p11), %s535_s12, 4294967168  ;;  %p21_p0 = scmp.ge.s32.totalorder %s991_s20, 4   ;;  %s1131_s24 = smov %s893_s25 }
 0x28b   : > { %s1132_s25 = smov %s897_s26  ;;  %s1133_s26 = smov %s1002_s23 }
 0x28c   : > { %s1134_s27 = smov %s991_s20  ;;  %23 = sbr.rel (!%p21_p0) target bundleno = 9 (0x9), region = 101 }
 0x291   :  { %541 = vsyncpa [#allocation3], 1 }
 0x292   :  { %543 = vsyncpa [#allocation3 + $0x1], 1 }
 0x293   :  { %544 = vsyncpa [#allocation6], 1 }
 0x294   :  { %545 = vsyncpa [#allocation4], 1 }
 0x295   :  { %547 = vsyncpa [#allocation4 + $0x1], 1 }

</bundles_post_ra>
